<compile_context>
chip_gen: v7x
topology: tpu7x:2x2x1
jax: 0.10.0
libtpu: 0.0.40
codegen_flags: <defaults>
</compile_context>

<pallas_src>
import jax
import jax.numpy as jnp
from jax.experimental import pallas as pl
from jax.experimental.pallas import tpu as pltpu


# -----------------------------------------------------------------------------
# Fused GIN conv + MLP + edge-head projection (transposed layout)
#   grid = (N_pad//tm  [parallel, row tiles],  N_pad//tk  [arbitrary, k reduction])
#   accT(F, tm) += xT_bf16(F, tk) @ bf16(B_int8(tk, tm))      (MXU, f32 accumulate)
#   at k == last: epilogue MLP + head projection, lane-dense (8, tm) store.
# -----------------------------------------------------------------------------
def gin_fused_kernel(eps_ref, mask_ref, xrow_ref, xk_ref, badj_ref,
                     w1t_ref, b1_ref, w2t_ref, b2_ref, wsdt_ref,
                     p_ref, acc_ref):
    i = pl.program_id(0)
    k = pl.program_id(1)

    @pl.when(k == 0)
    def _init():
        acc_ref[...] = jnp.zeros_like(acc_ref)

    # Block-sparse skip: only run the MXU dot when this adjacency tile has edges.
    @pl.when(mask_ref[i, k] != 0)
    def _accumulate():
        # int8 edge counts -> bf16 MXU operand (cast is VPU work hidden under DMA).
        b_bf16 = badj_ref[...].astype(jnp.float32).astype(jnp.bfloat16)
        acc_ref[...] += jnp.dot(xk_ref[...], b_bf16,
                                preferred_element_type=jnp.float32)

    @pl.when(k == pl.num_programs(1) - 1)
    def _epilogue():
        # (1+eps)*x self-term kept in f32 (exact), aggregation from f32 scratch.
        zT = (1.0 + eps_ref[0, 0]) * xrow_ref[...] + acc_ref[...]           # [F, tm]
        h1 = jnp.dot(w1t_ref[...], zT, preferred_element_type=jnp.float32)  # [H, tm]
        h1 = jnp.maximum(h1 + b1_ref[...], 0.0)
        h2 = jnp.dot(w2t_ref[...], h1, preferred_element_type=jnp.float32)  # [H, tm]
        hT = jnp.maximum(h2 + b2_ref[...], 0.0)                             # relu after conv
        # Edge-head projection folded in: row 0 = w_src.h, row 1 = w_dst.h.
        p_ref[...] = jnp.dot(wsdt_ref[...], hT,
                             preferred_element_type=jnp.float32)            # [8, tm]


# -----------------------------------------------------------------------------
# Wrapper
# -----------------------------------------------------------------------------
def _round_up(a, b):
    return (a + b - 1) // b * b


def _pick_tile(n_pad, cap, candidates):
    for t in candidates:
        if t <= cap and n_pad % t == 0:
            return t
    return n_pad


def build_adjacency(edge_index, n_pad):
    """Transposed dense adjacency B[j, i] = #edges j -> i, int8 (cacheable)."""
    src = edge_index[0].astype(jnp.int32)
    dst = edge_index[1].astype(jnp.int32)
    return jnp.zeros((n_pad, n_pad), jnp.int8).at[src, dst].add(1)


def gin_model_forward(params, x, edge_index, adjacency=None):
    N, F = x.shape
    H = params["w1"].shape[1]
    E = edge_index.shape[1]
    src = edge_index[0].astype(jnp.int32)
    dst = edge_index[1].astype(jnp.int32)

    N_pad = _round_up(max(N, 128), 128)

    # Row tile capped at N_pad//2 so grid[0] >= 2 (shardable across v7x's 2 TCs);
    # reduction tile tk as large as possible while keeping tk*tm <= 1M elements.
    tm = _pick_tile(N_pad, max(N_pad // 2, 128), (1024, 512, 256, 128))
    tk_cap = max((1 << 20) // tm, 256)
    tk = _pick_tile(N_pad, min(tk_cap, N_pad), (2048, 1024, 512, 256, 128))
    g_i, g_k = N_pad // tm, N_pad // tk

    # int8 adjacency (built once, or passed in / cached for static graphs).
    B = build_adjacency(edge_index, N_pad) if adjacency is None else adjacency

    # Per-(row-tile, k-tile) nonzero mask -> in-kernel block-sparse dot skipping.
    tile_mask = ((B != 0).reshape(g_k, tk, g_i, tm).any(axis=(1, 3))
                 .T.astype(jnp.int32))                                 # [g_i, g_k]

    # Transposed / padded node features. bf16 copy only feeds the aggregation matmul.
    xT = jnp.zeros((F, N_pad), jnp.float32).at[:, :N].set(x.T)
    xT_bf16 = xT.astype(jnp.bfloat16)

    # Transposed weights (tiny, one-time layout prep).
    w1t = params["w1"].T                          # [H, F]
    b1c = params["b1"].reshape(H, 1)              # [H, 1]
    w2t = params["w2"].T                          # [H, H]
    b2c = params["b2"].reshape(H, 1)              # [H, 1]
    wsdt = (jnp.zeros((8, H), jnp.float32)        # rows 0/1 = w_src / w_dst, rest pad
            .at[0].set(params["fc_w"][:H])
            .at[1].set(params["fc_w"][H:]))

    # VMEM sized to actual need (+ headroom), clamped [16 MiB, 48 MiB] (v7x-safe).
    vmem_need = (2 * tk * tm * 1                     # int8 B tile, double-buffered
                 + tk * tm * (4 + 2)                 # in-kernel cast temporaries
                 + 2 * F * tk * 2 + 2 * F * tm * 4   # xT streams
                 + max(F, 8) * tm * 4                # acc scratch
                 + (F + 3 * H + 16) * tm * 4         # epilogue temps + output
                 + 2 * (H * F + H * H + 2 * H + 8 * H) * 4)
    vmem_limit = int(min(max(vmem_need + (8 << 20), 16 << 20), 48 << 20))

    flops = 2 * N_pad * N_pad * F + 2 * N_pad * (F * H + H * H + 8 * H)
    bytes_accessed = (N_pad * N_pad * 1 + N_pad * F * (4 + 2) + 8 * N_pad * 4
                      + (H * F + H * H + 2 * H + 8 * H) * 4)

    p = pl.pallas_call(
        gin_fused_kernel,
        out_shape=jax.ShapeDtypeStruct((8, N_pad), jnp.float32),
        grid=(g_i, g_k),
        in_specs=[
            pl.BlockSpec(memory_space=pltpu.MemorySpace.SMEM),   # eps (1,1)
            pl.BlockSpec(memory_space=pltpu.MemorySpace.SMEM),   # tile mask (g_i,g_k)
            pl.BlockSpec((F, tm), lambda i, k: (0, i)),          # xT row tile (f32)
            pl.BlockSpec((F, tk), lambda i, k: (0, k)),          # xT k tile (bf16)
            pl.BlockSpec((tk, tm), lambda i, k: (k, i)),         # B tile (int8)
            pl.BlockSpec((H, F), lambda i, k: (0, 0)),           # W1^T
            pl.BlockSpec((H, 1), lambda i, k: (0, 0)),           # b1
            pl.BlockSpec((H, H), lambda i, k: (0, 0)),           # W2^T
            pl.BlockSpec((H, 1), lambda i, k: (0, 0)),           # b2
            pl.BlockSpec((8, H), lambda i, k: (0, 0)),           # Wsd^T (padded to 8)
        ],
        out_specs=pl.BlockSpec((8, tm), lambda i, k: (0, i)),
        scratch_shapes=[pltpu.VMEM((F, tm), jnp.float32)],
        compiler_params=pltpu.CompilerParams(
            dimension_semantics=("parallel", "arbitrary"),
            vmem_limit_bytes=vmem_limit),
        cost_estimate=pl.CostEstimate(
            flops=flops, transcendentals=0, bytes_accessed=bytes_accessed),
    )(params["eps"], tile_mask, xT, xT_bf16, B, w1t, b1c, w2t, b2c, wsdt)

    # Edge head: plain O(E) gather of per-node projections (no in-kernel one-hots).
    scores = p[0, src] + p[1, dst] + params["fc_b"][0, 0]
    return scores


# -----------------------------------------------------------------------------
# Deterministic parameter init (shapes from GINModel.__init__)
# -----------------------------------------------------------------------------
def init_params(key, num_features, hidden_size):
    k1, k2, k3 = jax.random.split(key, 3)
    s1 = 1.0 / jnp.sqrt(num_features)
    s2 = 1.0 / jnp.sqrt(hidden_size)
    s3 = 1.0 / jnp.sqrt(2 * hidden_size)
    return {
        "eps": jnp.zeros((1, 1), jnp.float32),   # train_eps=True -> init 0.0
        "w1": jax.random.uniform(k1, (num_features, hidden_size), jnp.float32, -s1, s1),
        "b1": jnp.zeros((hidden_size,), jnp.float32),
        "w2": jax.random.uniform(k2, (hidden_size, hidden_size), jnp.float32, -s2, s2),
        "b2": jnp.zeros((hidden_size,), jnp.float32),
        "fc_w": jax.random.uniform(k3, (2 * hidden_size,), jnp.float32, -s3, s3),
        "fc_b": jnp.zeros((1, 1), jnp.float32),
    }


# Pure-JAX (f32) reference for the sanity check.
def reference_forward(params, x, edge_index):
    N = x.shape[0]
    src, dst = edge_index[0], edge_index[1]
    adj = jnp.zeros((N, N), jnp.float32).at[dst, src].add(1.0)
    z = (1.0 + params["eps"][0, 0]) * x + adj @ x
    h = jnp.maximum(z @ params["w1"] + params["b1"], 0.0)
    h = h @ params["w2"] + params["b2"]
    h = jnp.maximum(h, 0.0)
    e = jnp.concatenate([h[src], h[dst]], axis=1)
    return e @ params["fc_w"] + params["fc_b"][0, 0]


if __name__ == "__main__":
    num_features = 4
    hidden_size = 32
    num_nodes = 16
    num_edges = 24

    key = jax.random.PRNGKey(0)
    kx, ke, kp = jax.random.split(key, 3)

    x = jax.random.normal(kx, (num_nodes, num_features), jnp.float32)
    edge_index = jax.random.randint(ke, (2, num_edges), 0, num_nodes, jnp.int32)
    params = init_params(kp, num_features, hidden_size)

    fwd = jax.jit(gin_model_forward)
    out = jax.block_until_ready(fwd(params, x, edge_index))

    ref = reference_forward(params, x, edge_index)
    assert out.shape == (num_edges,)
    # bf16 node features in the A@x aggregation (f32 accumulation) -> looser tolerance.
    assert jnp.allclose(out, ref, atol=2e-2, rtol=2e-2), (out, ref)

    print("KERNEL_OK")
</pallas_src>

<mosaic_0001>
module attributes {stable_mosaic.version = 11 : i64} {
  func.func @gin_fused_kernel(%arg0: i32, %arg1: i32, %arg2: memref<1x1xf32, #tpu.memory_space<smem>>, %arg3: memref<1x1xi32, #tpu.memory_space<smem>>, %arg4: memref<4x128xf32, #tpu.memory_space<vmem>>, %arg5: memref<4x128xbf16, #tpu.memory_space<vmem>>, %arg6: memref<128x128xi8, #tpu.memory_space<vmem>>, %arg7: memref<32x4xf32, #tpu.memory_space<vmem>>, %arg8: memref<32x1xf32, #tpu.memory_space<vmem>>, %arg9: memref<32x32xf32, #tpu.memory_space<vmem>>, %arg10: memref<32x1xf32, #tpu.memory_space<vmem>>, %arg11: memref<8x32xf32, #tpu.memory_space<vmem>>, %arg12: memref<8x128xf32, #tpu.memory_space<vmem>>, %arg13: memref<4x128xf32, #tpu.memory_space<vmem>>) attributes {dimension_semantics = [#tpu.dimension_semantics<parallel>, #tpu.dimension_semantics<arbitrary>], iteration_bounds = array<i64: 1, 1>, scalar_prefetch = 0 : i64, scratch_operands = 1 : i64, tpu.core_type = #tpu.core_type<tc>, window_params = [{transform_indices = @transform_0, window_bounds = array<i64: 1, 1>}, {transform_indices = @transform_1, window_bounds = array<i64: 1, 1>}, {transform_indices = @transform_2, window_bounds = array<i64: 4, 128>}, {transform_indices = @transform_3, window_bounds = array<i64: 4, 128>}, {transform_indices = @transform_4, window_bounds = array<i64: 128, 128>}, {pipeline_mode = #tpu.pipeline_mode<synchronous>, transform_indices = @transform_5, window_bounds = array<i64: 32, 4>}, {pipeline_mode = #tpu.pipeline_mode<synchronous>, transform_indices = @transform_6, window_bounds = array<i64: 32, 1>}, {pipeline_mode = #tpu.pipeline_mode<synchronous>, transform_indices = @transform_7, window_bounds = array<i64: 32, 32>}, {pipeline_mode = #tpu.pipeline_mode<synchronous>, transform_indices = @transform_8, window_bounds = array<i64: 32, 1>}, {pipeline_mode = #tpu.pipeline_mode<synchronous>, transform_indices = @transform_9, window_bounds = array<i64: 8, 32>}, {transform_indices = @transform_10, window_bounds = array<i64: 8, 128>}]} {
    %c0_i32 = arith.constant 0 : i32
    %0 = arith.cmpi eq, %arg1, %c0_i32 : i32
    %1 = arith.extui %0 : i1 to i32
    %c0_i32_0 = arith.constant 0 : i32
    %2 = arith.cmpi ne, %1, %c0_i32_0 : i32
    scf.if %2 {
      %cst = arith.constant 0.000000e+00 : f32
      %12 = vector.broadcast %cst : f32 to vector<4x128xf32>
      %c0 = arith.constant 0 : index
      %c0_5 = arith.constant 0 : index
      %13 = vector.load %arg13[%c0, %c0_5] : memref<4x128xf32, #tpu.memory_space<vmem>>, vector<4x128xf32>
      tpu.vector_store %arg13[%c0, %c0_5], %12 {strides = array<i32>} : memref<4x128xf32, #tpu.memory_space<vmem>>, vector<4x128xf32>,
    } else {
    }
    %3 = arith.index_cast %arg0 : i32 to index
    %4 = arith.index_cast %arg1 : i32 to index
    %5 = memref.load %arg3[%3, %4] : memref<1x1xi32, #tpu.memory_space<smem>>
    %c0_i32_1 = arith.constant 0 : i32
    %6 = arith.cmpi ne, %5, %c0_i32_1 : i32
    %7 = arith.extui %6 : i1 to i32
    %c0_i32_2 = arith.constant 0 : i32
    %8 = arith.cmpi ne, %7, %c0_i32_2 : i32
    scf.if %8 {
      %c0 = arith.constant 0 : index
      %c0_5 = arith.constant 0 : index
      %12 = vector.load %arg6[%c0, %c0_5] : memref<128x128xi8, #tpu.memory_space<vmem>>, vector<128x128xi8>
      %13 = arith.sitofp %12 : vector<128x128xi8> to vector<128x128xf32>
      %14 = arith.truncf %13 : vector<128x128xf32> to vector<128x128xbf16>
      %c0_6 = arith.constant 0 : index
      %c0_7 = arith.constant 0 : index
      %15 = vector.load %arg13[%c0_6, %c0_7] : memref<4x128xf32, #tpu.memory_space<vmem>>, vector<4x128xf32>
      %c0_8 = arith.constant 0 : index
      %c0_9 = arith.constant 0 : index
      %16 = vector.load %arg5[%c0_8, %c0_9] : memref<4x128xbf16, #tpu.memory_space<vmem>>, vector<4x128xbf16>
      %cst = arith.constant dense<0.000000e+00> : vector<4x128xf32>
      %17 = tpu.matmul %16, %14, %cst {dimension_numbers = #tpu.dot_dimension_numbers<[1], [0], [0], [1], [0, 0, 1, 1], [], []>} : vector<4x128xbf16>, vector<128x128xbf16>, vector<4x128xf32> -> vector<4x128xf32>
      %18 = arith.addf %15, %17 : vector<4x128xf32>
      %c0_10 = arith.constant 0 : index
      %c0_11 = arith.constant 0 : index
      %19 = vector.load %arg13[%c0_10, %c0_11] : memref<4x128xf32, #tpu.memory_space<vmem>>, vector<4x128xf32>
      tpu.vector_store %arg13[%c0_10, %c0_11], %18 {strides = array<i32>} : memref<4x128xf32, #tpu.memory_space<vmem>>, vector<4x128xf32>,
    } else {
    }
    %c0_i32_3 = arith.constant 0 : i32
    %9 = arith.cmpi eq, %arg1, %c0_i32_3 : i32
    %10 = arith.extui %9 : i1 to i32
    %c0_i32_4 = arith.constant 0 : i32
    %11 = arith.cmpi ne, %10, %c0_i32_4 : i32
    scf.if %11 {
      %c0 = arith.constant 0 : index
      %c0_5 = arith.constant 0 : index
      %12 = memref.load %arg2[%c0, %c0_5] : memref<1x1xf32, #tpu.memory_space<smem>>
      %cst = arith.constant 1.000000e+00 : f32
      %13 = arith.addf %cst, %12 : f32
      %c0_6 = arith.constant 0 : index
      %c0_7 = arith.constant 0 : index
      %14 = vector.load %arg4[%c0_6, %c0_7] : memref<4x128xf32, #tpu.memory_space<vmem>>, vector<4x128xf32>
      %15 = vector.broadcast %13 : f32 to vector<4x128xf32>
      %16 = arith.mulf %15, %14 : vector<4x128xf32>
      %c0_8 = arith.constant 0 : index
      %c0_9 = arith.constant 0 : index
      %17 = vector.load %arg13[%c0_8, %c0_9] : memref<4x128xf32, #tpu.memory_space<vmem>>, vector<4x128xf32>
      %18 = arith.addf %16, %17 : vector<4x128xf32>
      %c0_10 = arith.constant 0 : index
      %c0_11 = arith.constant 0 : index
      %19 = vector.load %arg7[%c0_10, %c0_11] : memref<32x4xf32, #tpu.memory_space<vmem>>, vector<32x4xf32>
      %cst_12 = arith.constant dense<0.000000e+00> : vector<32x128xf32>
      %20 = tpu.matmul %19, %18, %cst_12 {dimension_numbers = #tpu.dot_dimension_numbers<[1], [0], [0], [1], [0, 0, 1, 1], [], []>} : vector<32x4xf32>, vector<4x128xf32>, vector<32x128xf32> -> vector<32x128xf32>
      %c0_13 = arith.constant 0 : index
      %c0_14 = arith.constant 0 : index
      %21 = vector.load %arg8[%c0_13, %c0_14] : memref<32x1xf32, #tpu.memory_space<vmem>>, vector<32x1xf32>
      %22 = vector.broadcast %21 : vector<32x1xf32> to vector<32x128xf32>
      %23 = arith.addf %20, %22 : vector<32x128xf32>
      %cst_15 = arith.constant 0.000000e+00 : f32
      %24 = vector.broadcast %cst_15 : f32 to vector<32x128xf32>
      %25 = arith.maximumf %23, %24 : vector<32x128xf32>
      %c0_16 = arith.constant 0 : index
      %c0_17 = arith.constant 0 : index
      %26 = vector.load %arg9[%c0_16, %c0_17] : memref<32x32xf32, #tpu.memory_space<vmem>>, vector<32x32xf32>
      %cst_18 = arith.constant dense<0.000000e+00> : vector<32x128xf32>
      %27 = tpu.matmul %26, %25, %cst_18 {dimension_numbers = #tpu.dot_dimension_numbers<[1], [0], [0], [1], [0, 0, 1, 1], [], []>} : vector<32x32xf32>, vector<32x128xf32>, vector<32x128xf32> -> vector<32x128xf32>
      %c0_19 = arith.constant 0 : index
      %c0_20 = arith.constant 0 : index
      %28 = vector.load %arg10[%c0_19, %c0_20] : memref<32x1xf32, #tpu.memory_space<vmem>>, vector<32x1xf32>
      %29 = vector.broadcast %28 : vector<32x1xf32> to vector<32x128xf32>
      %30 = arith.addf %27, %29 : vector<32x128xf32>
      %cst_21 = arith.constant 0.000000e+00 : f32
      %31 = vector.broadcast %cst_21 : f32 to vector<32x128xf32>
      %32 = arith.maximumf %30, %31 : vector<32x128xf32>
      %c0_22 = arith.constant 0 : index
      %c0_23 = arith.constant 0 : index
      %33 = vector.load %arg11[%c0_22, %c0_23] : memref<8x32xf32, #tpu.memory_space<vmem>>, vector<8x32xf32>
      %cst_24 = arith.constant dense<0.000000e+00> : vector<8x128xf32>
      %34 = tpu.matmul %33, %32, %cst_24 {dimension_numbers = #tpu.dot_dimension_numbers<[1], [0], [0], [1], [0, 0, 1, 1], [], []>} : vector<8x32xf32>, vector<32x128xf32>, vector<8x128xf32> -> vector<8x128xf32>
      %c0_25 = arith.constant 0 : index
      %c0_26 = arith.constant 0 : index
      %35 = vector.load %arg12[%c0_25, %c0_26] : memref<8x128xf32, #tpu.memory_space<vmem>>, vector<8x128xf32>
      tpu.vector_store %arg12[%c0_25, %c0_26], %34 {strides = array<i32>} : memref<8x128xf32, #tpu.memory_space<vmem>>, vector<8x128xf32>,
    } else {
    }
    return
  }
  func.func @transform_0(%arg0: i32, %arg1: i32) -> (i32, i32) {
    %c0_i32 = arith.constant 0 : i32
    %c0_i32_0 = arith.constant 0 : i32
    %c0_i32_1 = arith.constant 0 : i32
    return %c0_i32, %c0_i32_0 : i32, i32
  }
  func.func @transform_1(%arg0: i32, %arg1: i32) -> (i32, i32) {
    %c0_i32 = arith.constant 0 : i32
    %c0_i32_0 = arith.constant 0 : i32
    %c0_i32_1 = arith.constant 0 : i32
    return %c0_i32, %c0_i32_0 : i32, i32
  }
  func.func @transform_2(%arg0: i32, %arg1: i32) -> (i32, i32) {
    %c0_i32 = arith.constant 0 : i32
    %c0_i32_0 = arith.constant 0 : i32
    return %c0_i32, %arg0 : i32, i32
  }
  func.func @transform_3(%arg0: i32, %arg1: i32) -> (i32, i32) {
    %c0_i32 = arith.constant 0 : i32
    %c0_i32_0 = arith.constant 0 : i32
    return %c0_i32, %arg1 : i32, i32
  }
  func.func @transform_4(%arg0: i32, %arg1: i32) -> (i32, i32) {
    %c0_i32 = arith.constant 0 : i32
    return %arg1, %arg0 : i32, i32
  }
  func.func @transform_5(%arg0: i32, %arg1: i32) -> (i32, i32) {
    %c0_i32 = arith.constant 0 : i32
    %c0_i32_0 = arith.constant 0 : i32
    %c0_i32_1 = arith.constant 0 : i32
    return %c0_i32, %c0_i32_0 : i32, i32
  }
  func.func @transform_6(%arg0: i32, %arg1: i32) -> (i32, i32) {
    %c0_i32 = arith.constant 0 : i32
    %c0_i32_0 = arith.constant 0 : i32
    %c0_i32_1 = arith.constant 0 : i32
    return %c0_i32, %c0_i32_0 : i32, i32
  }
  func.func @transform_7(%arg0: i32, %arg1: i32) -> (i32, i32) {
    %c0_i32 = arith.constant 0 : i32
    %c0_i32_0 = arith.constant 0 : i32
    %c0_i32_1 = arith.constant 0 : i32
    return %c0_i32, %c0_i32_0 : i32, i32
  }
  func.func @transform_8(%arg0: i32, %arg1: i32) -> (i32, i32) {
    %c0_i32 = arith.constant 0 : i32
    %c0_i32_0 = arith.constant 0 : i32
    %c0_i32_1 = arith.constant 0 : i32
    return %c0_i32, %c0_i32_0 : i32, i32
  }
  func.func @transform_9(%arg0: i32, %arg1: i32) -> (i32, i32) {
    %c0_i32 = arith.constant 0 : i32
    %c0_i32_0 = arith.constant 0 : i32
    %c0_i32_1 = arith.constant 0 : i32
    return %c0_i32, %c0_i32_0 : i32, i32
  }
  func.func @transform_10(%arg0: i32, %arg1: i32) -> (i32, i32) {
    %c0_i32 = arith.constant 0 : i32
    %c0_i32_0 = arith.constant 0 : i32
    return %c0_i32, %arg0 : i32, i32
  }
}

</mosaic_0001>

<bundles_post_ra>
// kernel: gin_model_forward.1
= control target key start
LH: loop header
LB: loop body
LE: loop exit
PB: predicated region body
PF: predicated region fallthrough
CT: control target
= control target key end

     0   :  { %v649_v0 = vmov 0.0   ;;  %s835_s0 = inlined_call_operand.<no memory space> [shape: f32[1,1], index: 0, kind: input, shape index: {}]   ;;  %s836_s1 = inlined_call_operand.<no memory space> [shape: s32[1,1], index: 1, kind: input, shape index: {}]   ;;  %s837_s2 = inlined_call_operand.vmem [shape: f32[4,128], index: 2, kind: input, shape index: {}]   ;;  %s838_s3 = inlined_call_operand.vmem [shape: bf16[4,128], index: 3, kind: input, shape index: {}]   ;;  %s839_s4 = inlined_call_operand.vmem [shape: s8[128,128], index: 4, kind: input, shape index: {}]   ;;  %s840_s5 = inlined_call_operand.vmem [shape: f32[32,4], index: 5, kind: input, shape index: {}]   ;;  %s841_s6 = inlined_call_operand.vmem [shape: f32[32,1], index: 6, kind: input, shape index: {}]   ;;  %s842_s7 = inlined_call_operand.vmem [shape: f32[32,32], index: 7, kind: input, shape index: {}]   ;;  %s843_s8 = inlined_call_operand.vmem [shape: f32[32,1], index: 8, kind: input, shape index: {}]   ;;  %s844_s9 = inlined_call_operand.vmem [shape: f32[8,32], index: 9, kind: input, shape index: {}]   ;;  %s845_s10 = inlined_call_operand.vmem [shape: f32[8,128], index: 10, kind: output, shape index: {}]  }
   0x1   :  { %15 = sst [smem:[#allocation3]] %s835_s0  ;;  %42 = vst [vmem:[#allocation2] sm:$0xf] %v649_v0  ;;  %p528_p0 = scmp.eq.s32.totalorder %s836_s1, 0 }
   0x2   :  { %v51_v1 = vld [vmem:[%s839_s4] sm:$0x3] (!%p528_p0)  ;;  %v52_v2 = vld [vmem:[%s839_s4 + $0x2] sm:$0x3] (!%p528_p0)  ;;  %v650_v3 = vmov (!%p528_p0), 0.0   ;;  %vm651_vm0 = vmmov (!%p528_p0), 0  }
   0x3   :  { %50 = sbr.rel (%p528_p0) target bundleno = 253 (0xfd), region = 49  ;;  %574 = vmatprep.subr.bf16.mxu0 (!%p528_p0), %v650_v3  ;;  %v67_v4 = vunpack.c.l.s8.bf16 (!%p528_p0), %v51_v1  ;;  %v68_v5 = vunpack.c.l.s8.bf16 (!%p528_p0), %v52_v2  ;;  %v53_v6 = vld [vmem:[%s839_s4 + $0x4] sm:$0x3] (!%p528_p0)  ;;  %v54_v7 = vld [vmem:[%s839_s4 + $0x6] sm:$0x3] (!%p528_p0)  ;;  %590 = vmatprep.mubr.msk.bf16.mxu0 (!%p528_p0), %vm651_vm0, %v650_v3 }
   0x4   :  { %v69_v8 = vunpack.c.l.s8.bf16 (!%p528_p0), %v53_v6  ;;  %v70_v9 = vunpack.c.l.s8.bf16 (!%p528_p0), %v54_v7  ;;  %v55_v10 = vld [vmem:[%s839_s4 + $0x8] sm:$0x3] (!%p528_p0)  ;;  %v56_v11 = vld [vmem:[%s839_s4 + $0xa] sm:$0x3] (!%p528_p0)  ;;  %v57_v16 = vld [vmem:[%s839_s4 + $0xc] sm:$0x3] (!%p528_p0) }
   0x5   :  { %v529_v12 = vcombine.low (!%p528_p0), %v67_v4, %v68_v5  ;;  %v71_v14 = vunpack.c.l.s8.bf16 (!%p528_p0), %v55_v10  ;;  %v72_v15 = vunpack.c.l.s8.bf16 (!%p528_p0), %v56_v11  ;;  %v58_v17 = vld [vmem:[%s839_s4 + $0xe] sm:$0x3] (!%p528_p0)  ;;  %v73_v19 = vunpack.c.l.s8.bf16 (!%p528_p0), %v57_v16  ;;  %v59_v21 = vld [vmem:[%s839_s4 + $0x10] sm:$0x3] (!%p528_p0)  ;;  %v60_v22 = vld [vmem:[%s839_s4 + $0x12] sm:$0x3] (!%p528_p0) }
   0x6   :  { %v530_v13 = vcombine.low (!%p528_p0), %v69_v8, %v70_v9  ;;  %v74_v20 = vunpack.c.l.s8.bf16 (!%p528_p0), %v58_v17  ;;  %v75_v24 = vunpack.c.l.s8.bf16 (!%p528_p0), %v59_v21  ;;  %v76_v25 = vunpack.c.l.s8.bf16 (!%p528_p0), %v60_v22  ;;  %v61_v26 = vld [vmem:[%s839_s4 + $0x14] sm:$0x3] (!%p528_p0)  ;;  %v62_v27 = vld [vmem:[%s839_s4 + $0x16] sm:$0x3] (!%p528_p0)  ;;  %v63_v31 = vld [vmem:[%s839_s4 + $0x18] sm:$0x3] (!%p528_p0) }
   0x7   :  { %575 = vmatpush3.bf16.msra.mxu0 (!%p528_p0), %v529_v12  ;;  %v531_v18 = vcombine.low (!%p528_p0), %v71_v14, %v72_v15  ;;  %v77_v29 = vunpack.c.l.s8.bf16 (!%p528_p0), %v61_v26  ;;  %v78_v30 = vunpack.c.l.s8.bf16 (!%p528_p0), %v62_v27  ;;  %v64_v32 = vld [vmem:[%s839_s4 + $0x1a] sm:$0x3] (!%p528_p0)  ;;  %v79_v34 = vunpack.c.l.s8.bf16 (!%p528_p0), %v63_v31  ;;  %v65_v36 = vld [vmem:[%s839_s4 + $0x1c] sm:$0x3] (!%p528_p0)  ;;  %v66_v37 = vld [vmem:[%s839_s4 + $0x1e] sm:$0x3] (!%p528_p0) }
   0x8   :  { %576 = vmatprep.subr.bf16.mxu0 (!%p528_p0), %v650_v3  ;;  %v532_v23 = vcombine.low (!%p528_p0), %v73_v19, %v74_v20  ;;  %v533_v28 = vcombine.low (!%p528_p0), %v75_v24, %v76_v25  ;;  %v80_v35 = vunpack.c.l.s8.bf16 (!%p528_p0), %v64_v32  ;;  %v81_v39 = vunpack.c.l.s8.bf16 (!%p528_p0), %v65_v36  ;;  %v84_v42 = vld [vmem:[%s838_s3] sm:$0x3] (!%p528_p0) }
   0x9   :  { %v534_v33 = vcombine.low (!%p528_p0), %v77_v29, %v78_v30  ;;  %v82_v40 = vunpack.c.l.s8.bf16 (!%p528_p0), %v66_v37  ;;  %v83_v43 = vld [vmem:[#allocation2] sm:$0xf] (!%p528_p0) }
   0xa   :  { %v535_v38 = vcombine.low %v79_v34, %v80_v35 }
   0xb   :  { %577 = vmatpush3.bf16.msra.mxu0 %v530_v13  ;;  %v536_v41 = vcombine.low %v81_v39, %v82_v40 }
   0xc   :  { %578 = vmatprep.subr.bf16.mxu0 %v650_v3 }
   0xf   :  { %579 = vmatpush3.bf16.msra.mxu0 %v531_v18 }
  0x10   :  { %580 = vmatprep.subr.bf16.mxu0 %v650_v3 }
  0x13   :  { %581 = vmatpush3.bf16.msra.mxu0 %v532_v23 }
  0x14   :  { %582 = vmatprep.subr.bf16.mxu0 %v650_v3 }
  0x17   :  { %583 = vmatpush3.bf16.msra.mxu0 %v533_v28 }
  0x18   :  { %584 = vmatprep.subr.bf16.mxu0 %v650_v3 }
  0x1b   :  { %585 = vmatpush3.bf16.msra.mxu0 %v534_v33 }
  0x1c   :  { %586 = vmatprep.subr.bf16.mxu0 %v650_v3 }
  0x1f   :  { %587 = vmatpush3.bf16.msra.mxu0 %v535_v38 }
  0x20   :  { %588 = vmatprep.subr.bf16.mxu0 %v650_v3 }
  0x23   :  { %589 = vmatpush3.bf16.msra.mxu0 %v536_v41 }
  0x26   :  { %591 = vmatmul.mubr.bf16.vlgmr.msra.gmra.mrb[0].mxu0 %v84_v42 }
  0xf9   :  { %v167_v44 = vpop.f32.mrb[0].mxu0 }
  0xfa   :  { %v173_v45 = vadd.f32 %v167_v44, %v83_v43  ;;  %v592_v46 = vpop.f32.mrb[1].mxu0 }
  0xfb   :  { %v170_v47 = vpop.f32.mrb[2].mxu0 }
  0xfc   :  { %174 = vst [vmem:[#allocation2] sm:$0xf] %v173_v45  ;;  %v593_v48 = vpop.f32.mrb[3].mxu0 }
  0xfd PF:  { %s178_s4 = sld [smem:[#allocation3]]  ;;  %v185_v49 = vld [vmem:[%s840_s5] sm:$0xff]  ;;  %vm213_vm1 = vcmask 31744   ;;  %v652_v50 = vmov 0   ;;  %v191_v52 = vld [vmem:[%s841_s6 + $0x10] sm:$0xff]  ;;  %v190_v53 = vld [vmem:[%s841_s6 + $0x8] sm:$0xff] }
  0xfe   :  { %596 = vmatprep.mubr.msk.f32.mxu0 %vm213_vm1, %v185_v49  ;;  %647 = vset.pattern.permute.xlu0 %v652_v50  ;;  %v189_v51 = vld [vmem:[%s841_s6] sm:$0xff]  ;;  %v192_v54 = vld [vmem:[%s841_s6 + $0x18] sm:$0xff]  ;;  %v324_v60 = vld [vmem:[%s843_s8 + $0x8] sm:$0xff]  ;;  %vm226_vm2 = vcmask 1043456   ;;  %vm347_vm3 = vcmask 261120   ;;  %v653_v26 = vmov 0.0|0.0  }
  0xff   :  { %195 = vperm.xlu0 %647, %v189_v51   ;;  %648 = vset.pattern.permute.xlu1 %v652_v50  ;;  %v180_v55 = vld [vmem:[%s837_s2] sm:$0xf]  ;;  %v186_v62 = vld [vmem:[%s840_s5 + $0x8] sm:$0xff]  ;;  %v325_v63 = vld [vmem:[%s843_s8 + $0x10] sm:$0xff]  ;;  %vm654_vm4 = vmmov 0  }
 0x100   :  { %205 = vperm.xlu1 %648, %v191_v52   ;;  %v323_v58 = vld [vmem:[%s843_s8] sm:$0xff]  ;;  %v187_v1 = vld [vmem:[%s840_s5 + $0x10] sm:$0xff]  ;;  %v326_v2 = vld [vmem:[%s843_s8 + $0x18] sm:$0xff] }
 0x101   :  { %v188_v3 = vld [vmem:[%s840_s5 + $0x18] sm:$0xff]  ;;  %v319_v4 = vld [vmem:[%s842_s7] sm:$0xff]  ;;  %v320_v23 = vld [vmem:[%s842_s7 + $0x8] sm:$0xff] }
 0x102   :  { %610 = vmatprep.mubr.msk.f32.mxu1 %vm347_vm3, %v319_v4  ;;  %v321_v24 = vld [vmem:[%s842_s7 + $0x10] sm:$0xff]  ;;  %v322_v25 = vld [vmem:[%s842_s7 + $0x18] sm:$0xff]  ;;  %v449_v44 = vld [vmem:[%s844_s9] sm:$0xff] }
 0x103   :  { %s179_s16 = sadd.f32 1.0, %s178_s4  ;;  %200 = vperm.xlu0 %647, %v190_v53   ;;  %v183_v57 = vld [vmem:[#allocation2] sm:$0xf] }
 0x104   :  { %210 = vperm.xlu1 %648, %v192_v54  }
 0x105   :  { %v181_v56 = vstv %s179_s16 }
 0x106   :  { %v182_v59 = vmul.f32 %v181_v56, %v180_v55 }
 0x107   :  { %329 = vperm.xlu0 %647, %v323_v58  }
 0x108   :  { %v184_v61 = vadd.f32 %v183_v57, %v182_v59  ;;  %334 = vperm.xlu1 %648, %v324_v60  }
 0x10a   :  { %594 = vmatprep.subr.msk.mxu0 %vm226_vm2, %v184_v61 }
 0x10b   :  { %595 = vmatpush3.msk.msra.mxu0 %vm226_vm2, %v184_v61  ;;  %339 = vperm.xlu0 %647, %v325_v63  }
 0x10c   :  { %597 = vmatmul.mubr.msk.f32.vlgmr.msra.gmra.mrb[0].mxu0 %vm213_vm1, %v186_v62  ;;  %344 = vperm.xlu1 %648, %v326_v2  }
 0x10d   :  { %599 = vmatprep.mubr.msk.f32.mxu0 %vm213_vm1, %v187_v1  ;;  %635 = vmatprep.subr.bf16.mxu0 %v653_v26 }
 0x110   :  { %600 = vmatmul.mubr.msk.f32.gmra.mrb[2].mxu0 %vm213_vm1, %v188_v3 }
 0x111   :  { %624 = vmatprep.mubr.msk.f32.mxu0 %vm654_vm4, %v649_v0 }
 0x17e   :  { %v196_v5 = vpop.permute.xlu0 %195 }
 0x17f   :  { %v206_v6 = vpop.permute.xlu1 %205 }
 0x182   :  { %v201_v7 = vpop.permute.xlu0 %200 }
 0x183   :  { %v211_v13 = vpop.permute.xlu1 %210 }
 0x186   :  { %v330_v28 = vpop.permute.xlu0 %329 }
 0x187   :  { %v335_v27 = vpop.permute.xlu1 %334 }
 0x18a   :  { %v340_v37 = vpop.permute.xlu0 %339 }
 0x18b   :  { %v345_v34 = vpop.permute.xlu1 %344 }
 0x1df   :  { %v598_v8 = vpop.f32.mrb[0].mxu0 }
 0x1e0   :  { %v302_v9 = vadd.f32 %v598_v8, %v201_v7  ;;  %v296_v10 = vpop.f32.mrb[1].mxu0 }
 0x1e1   :  { %v297_v11 = vadd.f32 %v296_v10, %v196_v5 }
 0x1e2   :  { %v316_v12 = vmax.f32 %v302_v9, 0.0 }
 0x1e3   :  { %v315_v14 = vmax.f32 %v297_v11, 0.0  ;;  %v601_v15 = vpop.f32.mrb[2].mxu0 }
 0x1e4   :  { %v312_v16 = vadd.f32 %v601_v15, %v211_v13  ;;  %v306_v17 = vpop.f32.mrb[3].mxu0 }
 0x1e5   :  { %v307_v18 = vadd.f32 %v306_v17, %v206_v6  ;;  %v627_v19 = vpack.c.bf16 %v316_v12, %v315_v14 }
 0x1e6   :  { %v318_v20 = vmax.f32 %v312_v16, 0.0 }
 0x1e7   :  { %v317_v21 = vmax.f32 %v307_v18, 0.0  ;;  %628 = vmatprep.subr.bf16.mxu1 %v627_v19 }
 0x1e8   :  { %630 = vmatpush3.bf16.msra.mxu1 %v627_v19 }
 0x1e9   :  { %v631_v22 = vpack.c.bf16 %v318_v20, %v317_v21 }
 0x1eb   :  { %632 = vmatprep.subr.bf16.mxu1 %v631_v22 }
 0x1ec   :  { %634 = vmatpush3.bf16.msra.mxu1 %v631_v22 }
 0x1ef   :  { %611 = vmatmul.mubr.msk.f32.vlgmr.msra.gmra.mrb[0].mxu1 %vm347_vm3, %v320_v23 }
 0x1f0   :  { %613 = vmatprep.mubr.msk.f32.mxu1 %vm347_vm3, %v321_v24 }
 0x1f3   :  { %614 = vmatmul.mubr.msk.f32.gmra.mrb[2].mxu1 %vm347_vm3, %v322_v25 }
 0x2c2   :  { %v612_v29 = vpop.f32.mrb[0].mxu1 }
 0x2c3   :  { %v432_v30 = vadd.f32 %v612_v29, %v335_v27  ;;  %v426_v31 = vpop.f32.mrb[1].mxu1 }
 0x2c4   :  { %v427_v32 = vadd.f32 %v426_v31, %v330_v28 }
 0x2c5   :  { %v446_v33 = vmax.f32 %v432_v30, 0.0 }
 0x2c6   :  { %v445_v35 = vmax.f32 %v427_v32, 0.0  ;;  %v615_v36 = vpop.f32.mrb[2].mxu1 }
 0x2c7   :  { %v442_v38 = vadd.f32 %v615_v36, %v345_v34  ;;  %v436_v39 = vpop.f32.mrb[3].mxu1 }
 0x2c8   :  { %v636_v40 = vpack.c.bf16 %v446_v33, %v445_v35  ;;  %v437_v41 = vadd.f32 %v436_v39, %v340_v37 }
 0x2c9   :  { %v448_v42 = vmax.f32 %v442_v38, 0.0 }
 0x2ca   :  { %v447_v43 = vmax.f32 %v437_v41, 0.0  ;;  %637 = vmatpush3.bf16.msra.mxu0 %v636_v40 }
 0x2cb   :  { %638 = vmatprep.subr.bf16.mxu0 %v653_v26 }
 0x2cc   :  { %v639_v0 = vpack.c.bf16 %v448_v42, %v447_v43 }
 0x2ce   :  { %640 = vmatpush3.bf16.msra.mxu0 %v639_v0 }
 0x2d1   :  { %625 = vmatmul.mubr.msk.f32.vlgmr.msra.gmra.mrb[4].mxu0 %vm347_vm3, %v449_v44 }
 0x3a4   :  { %v519_v45 = vpop.f32.mrb[4].mxu0 }
 0x3a5   :  { %523 = vst [vmem:[%s845_s10] sm:$0xff] %v519_v45  ;;  %v626_v46 = vpop.f32.mrb[5].mxu0 }

</bundles_post_ra>
